<compile_context>
chip_gen: v7x
topology: tpu7x:2x2x1
jax: 0.10.0
libtpu: 0.0.40
codegen_flags: <defaults>
</compile_context>

<pallas_src>
import functools
import numpy as np
import jax
import jax.numpy as jnp
from jax import lax
from jax.experimental import pallas as pl
from jax.experimental.pallas import tpu as pltpu

BN_EPS = 1e-5
MAX_TK = 2048   # largest K tile (bf16: 256x2048 x-tile + 2048x256 w-tile ~ 2 MB/buf)
MAX_TN = 256    # 256-wide N tiles match v6e/v7x MXU width


def _round_up(x, m):
    return (x + m - 1) // m * m


def _pick_tile(padded, cap):
    """Largest multiple-of-128 divisor of `padded` that is <= cap."""
    units = padded // 128
    cap_units = max(cap // 128, 1)
    best = 1
    for d in range(1, min(units, cap_units) + 1):
        if units % d == 0:
            best = d
    return best * 128


def _choose_kp(K, max_tk=MAX_TK):
    """Pick a padded K (multiple of 128) that minimizes K grid steps."""
    base = _round_up(K, 128)
    best_kp, best_steps = base, None
    for extra in range(0, 17):
        kp = base + extra * 128
        steps = kp // _pick_tile(kp, max_tk)
        if best_steps is None or steps < best_steps:
            best_kp, best_steps = kp, steps
    return best_kp


# ----------------------------------------------------------------------------
# Pallas kernel 1: tiled bf16 matmul, f32 accumulator, fused
#                  scale / bias / optional residual / optional ReLU epilogue
# ----------------------------------------------------------------------------
def _mm_fused_kernel(*refs, relu, has_residual):
    if has_residual:
        x_ref, w_ref, s_ref, b_ref, r_ref, o_ref, acc_ref = refs
    else:
        x_ref, w_ref, s_ref, b_ref, o_ref, acc_ref = refs
        r_ref = None
    k = pl.program_id(2)

    @pl.when(k == 0)
    def _():
        acc_ref[...] = jnp.zeros_like(acc_ref)

    acc_ref[...] += jnp.dot(x_ref[...], w_ref[...],
                            preferred_element_type=jnp.float32)

    @pl.when(k == pl.num_programs(2) - 1)
    def _():
        out = acc_ref[...] * s_ref[...] + b_ref[...]
        if has_residual:
            out = out + r_ref[...]
        if relu:
            out = jnp.maximum(out, 0.0)
        o_ref[...] = out.astype(o_ref.dtype)


def _pack_weight(wm, scale, bias, kh=1, kw=1):
    """Pre-pad / pre-cast a (K, N) weight matrix + per-channel affine once."""
    wm = jnp.asarray(wm)
    K, N = wm.shape
    Kp = _choose_kp(K)
    Np = _round_up(N, 128)
    wp = jnp.zeros((Kp, Np), jnp.bfloat16).at[:K, :N].set(wm.astype(jnp.bfloat16))
    sp = jnp.zeros((1, Np), jnp.float32).at[0, :N].set(
        jnp.asarray(scale, jnp.float32))
    bp = jnp.zeros((1, Np), jnp.float32).at[0, :N].set(
        jnp.asarray(bias, jnp.float32))
    return {"wp": wp, "sp": sp, "bp": bp, "K": K, "N": N, "kh": kh, "kw": kw}


def matmul_packed(x2d, pack, relu=False, residual=None):
    """relu_opt((x @ W) * scale + bias [+ residual]) with pre-packed weights."""
    M, K = x2d.shape
    wp, sp, bp = pack["wp"], pack["sp"], pack["bp"]
    Kp, Np = wp.shape
    N = pack["N"]
    assert K == pack["K"], (K, pack["K"])

    tm = min(256, _round_up(M, 16))          # 16: bf16 sublane packing
    Mp = _round_up(M, tm)
    tk = _pick_tile(Kp, MAX_TK)
    tn = _pick_tile(Np, MAX_TN)

    xb = x2d.astype(jnp.bfloat16)
    if Mp == M and Kp == K:
        xp = xb
    else:
        xp = jnp.zeros((Mp, Kp), jnp.bfloat16).at[:M, :K].set(xb)

    in_specs = [
        pl.BlockSpec((tm, tk), lambda i, j, k: (i, k)),
        pl.BlockSpec((tk, tn), lambda i, j, k: (k, j)),
        pl.BlockSpec((1, tn), lambda i, j, k: (0, j)),
        pl.BlockSpec((1, tn), lambda i, j, k: (0, j)),
    ]
    args = [xp, wp, sp, bp]
    has_residual = residual is not None
    if has_residual:
        rf = residual.astype(jnp.float32)
        if Mp == M and Np == N:
            rp = rf
        else:
            rp = jnp.zeros((Mp, Np), jnp.float32).at[:M, :N].set(rf)
        in_specs.append(pl.BlockSpec((tm, tn), lambda i, j, k: (i, j)))
        args.append(rp)

    grid = (Mp // tm, Np // tn, Kp // tk)
    out = pl.pallas_call(
        functools.partial(_mm_fused_kernel, relu=relu, has_residual=has_residual),
        out_shape=jax.ShapeDtypeStruct((Mp, Np), jnp.float32),
        grid_spec=pltpu.PrefetchScalarGridSpec(
            num_scalar_prefetch=0,
            grid=grid,
            in_specs=in_specs,
            out_specs=pl.BlockSpec((tm, tn), lambda i, j, k: (i, j)),
            scratch_shapes=[pltpu.VMEM((tm, tn), jnp.float32)],
        ),
        compiler_params=pltpu.CompilerParams(
            dimension_semantics=("parallel", "parallel", "arbitrary"),
            vmem_limit_bytes=32 * 1024 * 1024),
    )(*args)
    return out[:M, :N]


# ----------------------------------------------------------------------------
# Pallas kernel 2: max-reduction over 3x3 pooling window patches (row-tiled)
# ----------------------------------------------------------------------------
def _maxpool_kernel(x_ref, o_ref):
    o_ref[...] = jnp.max(x_ref[...], axis=0)


def maxpool_3x3_s2(x):
    """MaxPool2d(kernel=3, stride=2, padding=1) on NHWC input."""
    B, H, W, C = x.shape
    pad, k, s = 1, 3, 2
    Ho = (H + 2 * pad - k) // s + 1
    Wo = (W + 2 * pad - k) // s + 1
    xp = jnp.full((B, H + 2 * pad, W + 2 * pad, C), -jnp.inf, jnp.float32)
    xp = xp.at[:, pad:pad + H, pad:pad + W, :].set(x.astype(jnp.float32))
    pats = []
    for dy in range(k):
        for dx in range(k):
            pats.append(
                xp[:, dy:dy + s * Ho:s, dx:dx + s * Wo:s, :].reshape(B * Ho * Wo, C))
    pat = jnp.stack(pats, axis=0)                              # (9, M, C)
    M = B * Ho * Wo
    tile_m = min(512, _round_up(M, 8))
    Mp, Cp = _round_up(M, tile_m), _round_up(C, 128)
    patp = jnp.full((k * k, Mp, Cp), -jnp.inf, jnp.float32).at[:, :M, :C].set(pat)
    out = pl.pallas_call(
        _maxpool_kernel,
        out_shape=jax.ShapeDtypeStruct((Mp, Cp), jnp.float32),
        grid=(Mp // tile_m,),
        in_specs=[pl.BlockSpec((k * k, tile_m, Cp), lambda i: (0, i, 0))],
        out_specs=pl.BlockSpec((tile_m, Cp), lambda i: (i, 0)),
    )(patp)
    return out[:M, :C].reshape(B, Ho, Wo, C)


# ----------------------------------------------------------------------------
# Pallas kernel 3: Channel Attention Module (CAM) core — (L, C) layout,
# dot_general (no explicit transposes), EUP reciprocal for softmax.
# ----------------------------------------------------------------------------
def _cam_kernel(x_ref, o_ref):
    x = x_ref[0]                                               # (Lp, C) f32
    # energy[c1, c2] = sum_l x[l, c1] * x[l, c2]
    energy = lax.dot_general(x, x, (((0,), (0,)), ((), ())),
                             preferred_element_type=jnp.float32)  # (C, C)
    e_new = jnp.max(energy, axis=-1, keepdims=True) - energy
    e_new = e_new - jnp.max(e_new, axis=-1, keepdims=True)
    p = jnp.exp(e_new)
    denom = jnp.sum(p, axis=-1, keepdims=True)
    attn = p * pl.reciprocal(denom, approx=True)               # (C, C)
    # out[l, c] = sum_c2 attn[c, c2] * x[l, c2]
    o_ref[0] = lax.dot_general(x, attn, (((1,), (1,)), ((), ())),
                               preferred_element_type=jnp.float32)


def cam_module(x, gamma):
    B, H, W, C = x.shape
    L = H * W
    Lp = _round_up(L, 8)
    xt = x.reshape(B, L, C).astype(jnp.float32)
    xtp = jnp.zeros((B, Lp, C), jnp.float32).at[:, :L, :].set(xt)
    out = pl.pallas_call(
        _cam_kernel,
        out_shape=jax.ShapeDtypeStruct((B, Lp, C), jnp.float32),
        grid=(B,),
        in_specs=[pl.BlockSpec((1, Lp, C), lambda b: (b, 0, 0))],
        out_specs=pl.BlockSpec((1, Lp, C), lambda b: (b, 0, 0)),
    )(xtp)
    out = out[:, :L, :].reshape(B, H, W, C)
    return gamma * out + x


# ----------------------------------------------------------------------------
# Pallas kernel 4: Position Attention Module (PAM) core — (L, C) layout.
# TODO(synk): for large L, tile the key/value axis with online softmax.
# ----------------------------------------------------------------------------
def _pam_kernel(q_ref, k_ref, v_ref, o_ref, *, L):
    q = q_ref[0]                                               # (Lp, C8)
    k = k_ref[0]                                               # (Lp, C8)
    v = v_ref[0]                                               # (Lp, C)
    energy = lax.dot_general(q, k, (((1,), (1,)), ((), ())),
                             preferred_element_type=jnp.float32)  # (Lp, Lp)
    col = lax.broadcasted_iota(jnp.int32, energy.shape, 1)
    energy = jnp.where(col < L, energy, -1e30)
    energy = energy - jnp.max(energy, axis=-1, keepdims=True)
    p = jnp.exp(energy)
    denom = jnp.sum(p, axis=-1, keepdims=True)
    attn = p * pl.reciprocal(denom, approx=True)               # (Lp, Lp)
    # out[l, c] = sum_j attn[l, j] * v[j, c]
    o_ref[0] = jnp.dot(attn, v, preferred_element_type=jnp.float32)


def pam_module(x, p):
    B, H, W, C = x.shape
    L = H * W
    C8 = C // 8
    xf = x.reshape(B * L, C)
    q = matmul_packed(xf, p["q"]).reshape(B, L, C8)
    k = matmul_packed(xf, p["k"]).reshape(B, L, C8)
    v = matmul_packed(xf, p["v"]).reshape(B, L, C)
    Lp = _round_up(L, 8)
    qp = jnp.zeros((B, Lp, C8), jnp.float32).at[:, :L, :].set(q)
    kp = jnp.zeros((B, Lp, C8), jnp.float32).at[:, :L, :].set(k)
    vp = jnp.zeros((B, Lp, C), jnp.float32).at[:, :L, :].set(v)
    out = pl.pallas_call(
        functools.partial(_pam_kernel, L=L),
        out_shape=jax.ShapeDtypeStruct((B, Lp, C), jnp.float32),
        grid=(B,),
        in_specs=[pl.BlockSpec((1, Lp, C8), lambda b: (b, 0, 0)),
                  pl.BlockSpec((1, Lp, C8), lambda b: (b, 0, 0)),
                  pl.BlockSpec((1, Lp, C), lambda b: (b, 0, 0))],
        out_specs=pl.BlockSpec((1, Lp, C), lambda b: (b, 0, 0)),
    )(qp, kp, vp)
    out = out[:, :L, :].reshape(B, H, W, C)
    return p["gamma"] * out + x


# ----------------------------------------------------------------------------
# Convolution = im2col (glue) + Pallas fused matmul (pre-packed weights)
# ----------------------------------------------------------------------------
def conv2d_pack(x, pack, stride=1, padding=0, relu=False, residual=None):
    """x: NHWC; pack holds the pre-padded (kh*kw*Cin, Cout) bf16 weight."""
    B, H, W, Cin = x.shape
    kh, kw = pack["kh"], pack["kw"]
    Ho = (H + 2 * padding - kh) // stride + 1
    Wo = (W + 2 * padding - kw) // stride + 1
    if kh == 1 and kw == 1 and padding == 0:
        xs = x[:, ::stride, ::stride, :] if stride > 1 else x
        pat = xs.reshape(B * Ho * Wo, Cin)
    else:
        xp = jnp.pad(x, ((0, 0), (padding, padding), (padding, padding), (0, 0)))
        pats = []
        for dy in range(kh):
            for dx in range(kw):
                pats.append(xp[:, dy:dy + stride * Ho:stride,
                               dx:dx + stride * Wo:stride, :])
        pat = jnp.stack(pats, axis=3).reshape(B * Ho * Wo, kh * kw * Cin)
    res2d = None if residual is None else residual.reshape(B * Ho * Wo, -1)
    out = matmul_packed(pat, pack, relu=relu, residual=res2d)
    return out.reshape(B, Ho, Wo, pack["N"])


# ----------------------------------------------------------------------------
# Bilinear resize = one Pallas matmul against a combined kron(Rh, Rw) matrix
# ----------------------------------------------------------------------------
def _bilinear_matrix(n_in, n_out, align_corners):
    R = np.zeros((n_out, n_in), np.float32)
    for o in range(n_out):
        if align_corners:
            src = o * (n_in - 1) / (n_out - 1) if n_out > 1 else 0.0
        else:
            src = (o + 0.5) * (n_in / n_out) - 0.5
            src = max(src, 0.0)
        i0 = min(int(np.floor(src)), n_in - 1)
        i1 = min(i0 + 1, n_in - 1)
        w1 = src - i0
        R[o, i0] += 1.0 - w1
        R[o, i1] += w1
    return R


_RESIZE_PACKS = {}


def _resize_pack(H, W, Ho, Wo, align_corners):
    key = (H, W, Ho, Wo, align_corners)
    if key not in _RESIZE_PACKS:
        Rh = _bilinear_matrix(H, Ho, align_corners)            # (Ho, H)
        Rw = _bilinear_matrix(W, Wo, align_corners)            # (Wo, W)
        R = np.kron(Rh, Rw)                                    # (Ho*Wo, H*W)
        _RESIZE_PACKS[key] = _pack_weight(
            jnp.asarray(R.T),                                  # (H*W, Ho*Wo)
            jnp.ones((Ho * Wo,), jnp.float32),
            jnp.zeros((Ho * Wo,), jnp.float32))
    return _RESIZE_PACKS[key]


def bilinear_resize(x, Ho, Wo, align_corners):
    B, H, W, C = x.shape
    pack = _resize_pack(H, W, Ho, Wo, align_corners)
    t = x.transpose(0, 3, 1, 2).reshape(B * C, H * W)
    out = matmul_packed(t, pack)                               # (B*C, Ho*Wo)
    return out.reshape(B, C, Ho, Wo).transpose(0, 2, 3, 1)


# ----------------------------------------------------------------------------
# Deterministic parameter construction (shapes dictated by module __init__)
# ----------------------------------------------------------------------------
class ParamGen:
    def __init__(self, seed=0):
        self.key = jax.random.PRNGKey(seed)

    def _next(self):
        self.key, k = jax.random.split(self.key)
        return k

    def conv(self, kh, kw, cin, cout):
        std = (2.0 / (kh * kw * cin)) ** 0.5
        return jax.random.normal(self._next(), (kh, kw, cin, cout), jnp.float32) * std


def _bn_fold(c):
    # fresh BN: gamma=1, beta=0, running_mean=0, running_var=1
    scale = jnp.full((c,), 1.0 / np.sqrt(1.0 + BN_EPS), jnp.float32)
    bias = jnp.zeros((c,), jnp.float32)
    return scale, bias


def conv_pack(pg, kh, kw, cin, cout, bn=True):
    w = pg.conv(kh, kw, cin, cout)
    if bn:
        scale, bias = _bn_fold(cout)
    else:
        scale = jnp.ones((cout,), jnp.float32)
        bias = jnp.zeros((cout,), jnp.float32)   # conv bias (zeros init)
    return _pack_weight(w.reshape(kh * kw * cin, cout), scale, bias, kh=kh, kw=kw)


def make_bottleneck(pg, inplanes, planes, stride=1, downsample=False):
    d = {"c1": conv_pack(pg, 1, 1, inplanes, planes),
         "c2": conv_pack(pg, 3, 3, planes, planes),
         "c3": conv_pack(pg, 1, 1, planes, planes * 4),
         "stride": stride}
    if downsample:
        d["dw"] = conv_pack(pg, 1, 1, inplanes, planes * 4)
    return d


def apply_bottleneck(p, x):
    if "dw" in p:
        residual = conv2d_pack(x, p["dw"], stride=p["stride"], padding=0, relu=False)
    else:
        residual = x
    out = conv2d_pack(x, p["c1"], stride=1, padding=0, relu=True)
    out = conv2d_pack(out, p["c2"], stride=p["stride"], padding=1, relu=True)
    # conv3 + BN + residual add + ReLU fused into one matmul epilogue
    out = conv2d_pack(out, p["c3"], stride=1, padding=0, relu=True, residual=residual)
    return out


def make_resnet50(pg):
    params = {"conv1": conv_pack(pg, 7, 7, 3, 64)}
    cfg = [(64, 3, 1), (128, 4, 2), (256, 6, 2), (512, 3, 2)]
    inplanes = 64
    layers = []
    for planes, blocks, stride in cfg:
        downsample = (stride != 1) or (inplanes != planes * 4)
        blks = [make_bottleneck(pg, inplanes, planes, stride, downsample)]
        inplanes = planes * 4
        for _ in range(1, blocks):
            blks.append(make_bottleneck(pg, inplanes, planes, 1, False))
        layers.append(blks)
    params["layers"] = layers
    return params


def apply_resnet50(p, x):
    x = conv2d_pack(x, p["conv1"], stride=2, padding=3, relu=True)
    x = maxpool_3x3_s2(x)
    blocks = []
    for layer in p["layers"]:
        for blk in layer:
            x = apply_bottleneck(blk, x)
        blocks.append(x)
    return blocks                                   # [layer1, layer2, layer3, layer4]


def make_ffm(pg, in_planes, out_planes, reduction=1):
    return {"w1x1": conv_pack(pg, 1, 1, in_planes, out_planes, bn=True),
            "ca1": conv_pack(pg, 1, 1, out_planes, out_planes // reduction, bn=False),
            "ca2": conv_pack(pg, 1, 1, out_planes // reduction, out_planes, bn=False)}


def apply_ffm(p, x1, x2):
    fm_in = jnp.concatenate([x1, x2], axis=-1)
    fm = conv2d_pack(fm_in, p["w1x1"], relu=True)
    pooled = jnp.mean(fm, axis=(1, 2))              # AdaptiveAvgPool2d(1), glue
    h1 = matmul_packed(pooled, p["ca1"], relu=True)
    h2 = matmul_packed(h1, p["ca2"], relu=False)
    se = jax.nn.sigmoid(h2)                         # (B, C)
    return fm + fm * se[:, None, None, :]


def make_output_head(pg, in_planes, n_classes, is_aux=True):
    mid = 256 if is_aux else 64
    return {"c3": conv_pack(pg, 3, 3, in_planes, mid, bn=True),
            "c1": conv_pack(pg, 1, 1, mid, n_classes, bn=False)}


def apply_output_head(p, x, scale):
    fm = conv2d_pack(x, p["c3"], stride=1, padding=1, relu=True)
    out = conv2d_pack(fm, p["c1"], stride=1, padding=0, relu=False)
    if scale > 1:
        out = bilinear_resize(out, out.shape[1] * scale, out.shape[2] * scale,
                              align_corners=True)
    return out


def make_nhbsnet(pg, n_classes=7):
    return {
        "backbone": make_resnet50(pg),
        "refine3x3": conv_pack(pg, 3, 3, 2048, 512, bn=True),
        "refine1x1": conv_pack(pg, 3, 3, 512, 512, bn=True),
        "ca_gamma": jnp.zeros((1,), jnp.float32),           # nn.Parameter(zeros(1))
        "pa": {"q": conv_pack(pg, 1, 1, 512, 64, bn=False),
               "k": conv_pack(pg, 1, 1, 512, 64, bn=False),
               "v": conv_pack(pg, 1, 1, 512, 512, bn=False),
               "gamma": jnp.zeros((1,), jnp.float32)},
        "ffm": make_ffm(pg, 1024, 512),
        "low_ffm": make_ffm(pg, 1024, 1024),
        "head": make_output_head(pg, 1026, n_classes, is_aux=True),
    }


def nhbsnet_forward(params, data_nchw):
    x = jnp.transpose(data_nchw, (0, 2, 3, 1)).astype(jnp.float32)   # NCHW -> NHWC
    blocks = apply_resnet50(params["backbone"], x)
    blocks = blocks[::-1]                                            # reverse()
    refine = conv2d_pack(blocks[0], params["refine3x3"], stride=1, padding=1, relu=True)
    refine = conv2d_pack(refine, params["refine1x1"], stride=1, padding=1, relu=True)
    ca = cam_module(refine, params["ca_gamma"])
    pa = pam_module(refine, params["pa"])
    ffm = apply_ffm(params["ffm"], ca, pa)
    low = blocks[2]                                                  # layer2 output
    fm = bilinear_resize(ffm, low.shape[1], low.shape[2], align_corners=False)
    h = apply_ffm(params["low_ffm"], fm, low)
    B, H, W, _ = h.shape
    x_range = jnp.linspace(-1.0, 1.0, W)
    y_range = jnp.linspace(-1.0, 1.0, H)
    Y, X = jnp.meshgrid(y_range, x_range, indexing="ij")
    Xc = jnp.broadcast_to(X[None, :, :, None], (B, H, W, 1))
    Yc = jnp.broadcast_to(Y[None, :, :, None], (B, H, W, 1))
    h = jnp.concatenate([h, Xc, Yc], axis=-1)                        # cat([h, X, Y])
    out = apply_output_head(params["head"], h, scale=8)
    return jnp.transpose(out, (0, 3, 1, 2))                          # NHWC -> NCHW


if __name__ == "__main__":
    key = jax.random.PRNGKey(0)
    data = jax.random.normal(key, (2, 3, 64, 64), jnp.float32)       # NCHW input
    pg = ParamGen(seed=0)
    params = make_nhbsnet(pg, n_classes=7)
    out = nhbsnet_forward(params, data)
    out = jax.block_until_ready(out)
    assert out.shape == (2, 7, 64, 64), out.shape
    assert bool(jnp.all(jnp.isfinite(out)))
    print("KERNEL_OK")
</pallas_src>

<mosaic_0001>
module attributes {stable_mosaic.version = 11 : i64} {
  func.func @_mm_fused_kernel(%arg0: i32, %arg1: i32, %arg2: i32, %arg3: memref<256x256xbf16, #tpu.memory_space<vmem>>, %arg4: memref<256x128xbf16, #tpu.memory_space<vmem>>, %arg5: memref<1x128xf32, #tpu.memory_space<vmem>>, %arg6: memref<1x128xf32, #tpu.memory_space<vmem>>, %arg7: memref<256x128xf32, #tpu.memory_space<vmem>>, %arg8: memref<256x128xf32, #tpu.memory_space<vmem>>) attributes {dimension_semantics = [#tpu.dimension_semantics<parallel>, #tpu.dimension_semantics<parallel>, #tpu.dimension_semantics<arbitrary>], iteration_bounds = array<i64: 8, 1, 1>, scalar_prefetch = 0 : i64, scratch_operands = 1 : i64, tpu.core_type = #tpu.core_type<tc>, window_params = [{transform_indices = @transform_0, window_bounds = array<i64: 256, 256>}, {transform_indices = @transform_1, window_bounds = array<i64: 256, 128>}, {transform_indices = @transform_2, window_bounds = array<i64: 1, 128>}, {transform_indices = @transform_3, window_bounds = array<i64: 1, 128>}, {transform_indices = @transform_4, window_bounds = array<i64: 256, 128>}]} {
    %c0_i32 = arith.constant 0 : i32
    %0 = arith.cmpi eq, %arg2, %c0_i32 : i32
    %1 = arith.extui %0 : i1 to i32
    %c0_i32_0 = arith.constant 0 : i32
    %2 = arith.cmpi ne, %1, %c0_i32_0 : i32
    scf.if %2 {
      %cst_10 = arith.constant 0.000000e+00 : f32
      %12 = vector.broadcast %cst_10 : f32 to vector<256x128xf32>
      %c0_11 = arith.constant 0 : index
      %c0_12 = arith.constant 0 : index
      %13 = vector.load %arg8[%c0_11, %c0_12] : memref<256x128xf32, #tpu.memory_space<vmem>>, vector<256x128xf32>
      tpu.vector_store %arg8[%c0_11, %c0_12], %12 {strides = array<i32>} : memref<256x128xf32, #tpu.memory_space<vmem>>, vector<256x128xf32>,
    } else {
    }
    %c0 = arith.constant 0 : index
    %c0_1 = arith.constant 0 : index
    %3 = vector.load %arg8[%c0, %c0_1] : memref<256x128xf32, #tpu.memory_space<vmem>>, vector<256x128xf32>
    %c0_2 = arith.constant 0 : index
    %c0_3 = arith.constant 0 : index
    %4 = vector.load %arg3[%c0_2, %c0_3] : memref<256x256xbf16, #tpu.memory_space<vmem>>, vector<256x256xbf16>
    %c0_4 = arith.constant 0 : index
    %c0_5 = arith.constant 0 : index
    %5 = vector.load %arg4[%c0_4, %c0_5] : memref<256x128xbf16, #tpu.memory_space<vmem>>, vector<256x128xbf16>
    %cst = arith.constant dense<0.000000e+00> : vector<256x128xf32>
    %6 = tpu.matmul %4, %5, %cst {dimension_numbers = #tpu.dot_dimension_numbers<[1], [0], [0], [1], [0, 0, 1, 1], [], []>} : vector<256x256xbf16>, vector<256x128xbf16>, vector<256x128xf32> -> vector<256x128xf32>
    %7 = arith.addf %3, %6 : vector<256x128xf32>
    %c0_6 = arith.constant 0 : index
    %c0_7 = arith.constant 0 : index
    %8 = vector.load %arg8[%c0_6, %c0_7] : memref<256x128xf32, #tpu.memory_space<vmem>>, vector<256x128xf32>
    tpu.vector_store %arg8[%c0_6, %c0_7], %7 {strides = array<i32>} : memref<256x128xf32, #tpu.memory_space<vmem>>, vector<256x128xf32>,
    %c0_i32_8 = arith.constant 0 : i32
    %9 = arith.cmpi eq, %arg2, %c0_i32_8 : i32
    %10 = arith.extui %9 : i1 to i32
    %c0_i32_9 = arith.constant 0 : i32
    %11 = arith.cmpi ne, %10, %c0_i32_9 : i32
    scf.if %11 {
      %c0_10 = arith.constant 0 : index
      %c0_11 = arith.constant 0 : index
      %12 = vector.load %arg8[%c0_10, %c0_11] : memref<256x128xf32, #tpu.memory_space<vmem>>, vector<256x128xf32>
      %c0_12 = arith.constant 0 : index
      %c0_13 = arith.constant 0 : index
      %13 = vector.load %arg5[%c0_12, %c0_13] : memref<1x128xf32, #tpu.memory_space<vmem>>, vector<1x128xf32>
      %14 = vector.broadcast %13 : vector<1x128xf32> to vector<256x128xf32>
      %15 = arith.mulf %12, %14 : vector<256x128xf32>
      %c0_14 = arith.constant 0 : index
      %c0_15 = arith.constant 0 : index
      %16 = vector.load %arg6[%c0_14, %c0_15] : memref<1x128xf32, #tpu.memory_space<vmem>>, vector<1x128xf32>
      %17 = vector.broadcast %16 : vector<1x128xf32> to vector<256x128xf32>
      %18 = arith.addf %15, %17 : vector<256x128xf32>
      %cst_16 = arith.constant 0.000000e+00 : f32
      %19 = vector.broadcast %cst_16 : f32 to vector<256x128xf32>
      %20 = arith.maximumf %18, %19 : vector<256x128xf32>
      %c0_17 = arith.constant 0 : index
      %c0_18 = arith.constant 0 : index
      %21 = vector.load %arg7[%c0_17, %c0_18] : memref<256x128xf32, #tpu.memory_space<vmem>>, vector<256x128xf32>
      tpu.vector_store %arg7[%c0_17, %c0_18], %20 {strides = array<i32>} : memref<256x128xf32, #tpu.memory_space<vmem>>, vector<256x128xf32>,
    } else {
    }
    return
  }
  func.func @transform_0(%arg0: i32, %arg1: i32, %arg2: i32) -> (i32, i32) {
    %c0_i32 = arith.constant 0 : i32
    return %arg0, %arg2 : i32, i32
  }
  func.func @transform_1(%arg0: i32, %arg1: i32, %arg2: i32) -> (i32, i32) {
    %c0_i32 = arith.constant 0 : i32
    return %arg2, %arg1 : i32, i32
  }
  func.func @transform_2(%arg0: i32, %arg1: i32, %arg2: i32) -> (i32, i32) {
    %c0_i32 = arith.constant 0 : i32
    %c0_i32_0 = arith.constant 0 : i32
    return %c0_i32, %arg1 : i32, i32
  }
  func.func @transform_3(%arg0: i32, %arg1: i32, %arg2: i32) -> (i32, i32) {
    %c0_i32 = arith.constant 0 : i32
    %c0_i32_0 = arith.constant 0 : i32
    return %c0_i32, %arg1 : i32, i32
  }
  func.func @transform_4(%arg0: i32, %arg1: i32, %arg2: i32) -> (i32, i32) {
    %c0_i32 = arith.constant 0 : i32
    return %arg0, %arg1 : i32, i32
  }
}

</mosaic_0001>

<bundles_post_ra>
// kernel: tpu_custom_call.1
= control target key start
LH: loop header
LB: loop body
LE: loop exit
PB: predicated region body
PF: predicated region fallthrough
CT: control target
= control target key end

     0   :  { %9 = vsyncpa [#allocation4], 0  ;;  %s2121_s0 = inlined_call_operand.hbm [shape: bf16[2048,256], index: 0, kind: input, shape index: {}]   ;;  %s2122_s1 = inlined_call_operand.hbm [shape: bf16[256,128], index: 1, kind: input, shape index: {}]   ;;  %s2123_s2 = inlined_call_operand.vmem [shape: f32[1,128], index: 2, kind: input, shape index: {}]   ;;  %s2124_s3 = inlined_call_operand.vmem [shape: f32[1,128], index: 3, kind: input, shape index: {}]   ;;  %s2125_s4 = inlined_call_operand.hbm [shape: f32[2048,128], index: 4, kind: output, shape index: {}]  }
   0x1   :  { %11 = vsyncpa [#allocation4 + $0x1], 0 }
   0x2   :  { %12 = vsyncpa [#allocation7], 0 }
   0x3   :  { %13 = vsyncpa [#allocation5], 0 }
   0x4   :  { %15 = vsyncpa [#allocation5 + $0x1], 0  ;;  %s1757_s15 = smov 0   ;;  %s1759_s16 = smov 0  }
   0x5   :  { %s1761_s17 = smov 0   ;;  %s1763_s18 = smov 0  }
   0x6   :  { %s1765_s19 = smov 0   ;;  %s1767_s20 = smov 0  }
   0x7 LB: > { %s1233_s21 = sadd.s32 4294967295, %s1721_s20   ;;  %s1234_s22 = sadd.s32 4294967294, %s1721_s20   ;;  %s1721_s20 = sphi %s1767_s20, %s21_s20   ;;  %s1717_s19 = sphi %s1765_s19, %s2148_s19   ;;  %s1713_s18 = sphi %s1763_s18, %s2147_s18   ;;  %s1709_s17 = sphi %s1761_s17, %s2146_s17   ;;  %s1705_s16 = sphi %s1759_s16, %s2145_s16   ;;  %s1701_s15 = sphi %s1757_s15, %s2144_s15  }
   0x8   : > { %p62_p0 = scmp.ne.s32.totalorder %s1705_s16, %s1701_s15  ;;  %p1791_p1 = scmp.eq.s32.totalorder %s1233_s21, 0 }
   0x9   : > { %p1795_p2 = scmp.eq.s32.totalorder %s1233_s21, 7  ;;  %p174_p3 = scmp.eq.s32.totalorder %s1234_s22, 7 }
   0xa   : > { %s2130_s23 = scalar_select %p1791_p1, 1, 0 }
   0xb   : > { %s2131_s24 = scalar_select %p1795_p2, 1, 0 }
   0xc   : > { %p1801_p4 = por %p1791_p1, %p62_p0  ;;  %p1235_p5 = scmp.ge.s32.totalorder %s1721_s20, 1 }
   0xd   : > { %p1806_p6 = por %p174_p3, %p62_p0  ;;  %p181_p7 = scmp.lt.s32.totalorder %s1721_s20, 9 }
   0xe   : > { %s2132_s25 = scalar_select %p1801_p4, 1, 0 }
   0xf   : > { %s2133_s26 = scalar_select %p1806_p6, 1, 0 }
  0x10   : > { %p1811_p8 = pnand %p1235_p5, %p181_p7  ;;  %s1723_s28 = smov [#allocation6]  }
  0x11   : > { %s197_s29 = sshll.u32 %s1723_s28, 4  ;;  %s40_s5 = sadd.s32 1, %s1717_s19  ;;  %s198_s29 = int_to_ptr.vmem [resolvable:$true] %s197_s29 }
  0x12   : > { %s2134_s27 = scalar_select %p1811_p8, 1, 0 }
  0x13   : > { %p1442_p9 = pneg %p1811_p8  ;;  %s1577_s8 = scalar_lea.hbm %s2122_s1, 2048 }
  0x14   : > { %p1578_p11 = scmp.ne.s32.totalorder %s2122_s1, %s1577_s8  ;;  %p1584_p3 = scmp.lt.u32.totalorder %s1577_s8, %s2122_s1 }
  0x15   : > { %p1819_p10 = pnand %p1442_p9, %p1791_p1 }
  0x17   : > { %p1579_p12 = pneg %p1819_p10 }
  0x19   : > { %p1580_p13 = pnand %p1579_p12, %p1578_p11 }
  0x1b   : > { %p1581_p0 = pneg %p1580_p13 }
  0x1d   : > { %p1586_p5 = pnand %p1584_p3, %p1581_p0 }
  0x1f   : > { %1589 = shalt.err (!%p1586_p5)
}
  0x20   : > { %s1590_s13 = scalar_lea.vmem %s198_s29, 2048  ;;  %p1598_p1 = scmp.lt.s32.totalorder %s198_s29, %s198_s29 }
  0x21   : > { %p1591_p7 = scmp.ne.s32.totalorder %s198_s29, %s1590_s13  ;;  %p1599_p4 = scmp.lt.s32.totalorder %s1590_s13, %s1590_s13 }
  0x23   : > { %p1593_p9 = pnand %p1591_p7, %p1579_p12  ;;  %p1600_p8 = por %p1599_p4, %p1598_p1 }
  0x25   : > { %p1594_p6 = pneg %p1593_p9 }
  0x27   : > { %p1601_p2 = pnand %p1600_p8, %p1594_p6 }
  0x29   : > { %1604 = shalt.err (!%p1601_p2)
}
  0x2a   : > { %s1724_s14 = smov 64   ;;  %s1725_s21 = smov 4  }
  0x2b   : > { %1445 = dma.hbm_to_vmem [thread:$0]  (!%p1819_p10), %s2122_s1, 2048, %s198_s29, [#allocation7], %s1724_s14, %s1724_s14, %s1725_s21  }
  0x2c   : > { %p42_p1 = scmp.ge.s32.totalorder %s40_s5, 8  ;;  %s49_s6 = sadd.s32 1, %s1709_s17 }
  0x2d   : > { %p56_p2 = scmp.ne.s32.totalorder %s1709_s17, %s1705_s16  ;;  %p57_p4 = scmp.eq.s32.totalorder %s1721_s20, 0 }
  0x2e   : > { %s2150_s5 = smov (%p42_p1, %s40_s5), 0  ;;  %p2137_p8 = scmp.ne.s32.totalorder %s2131_s24, 0 }
  0x2f   : > { %p1846_p6 = por %p57_p4, %p56_p2  ;;  %s44_s30 = ssub.s32 %s1717_s19, %s2150_s5 }
  0x30   : > { %p1852_p11 = por %p2137_p8, %p56_p2  ;;  %p1455_p12 = scmp.lt.s32.totalorder %s1721_s20, 8 }
  0x31   : > { %p47_p10 = scmp.eq.s32.totalorder %s44_s30, 0  ;;  %s223_s29 = sand.u32 1, %s1709_s17  }
  0x32   : > { %s1240_s9 = sshll.u32 %s223_s29, 8  ;;  %s1304_s11 = sshll.u32 %s1717_s19, 12 }
  0x33   : > { %s1861_s10 = scalar_select %p47_p10, %s1709_s17, %s49_s6  }
  0x34   : > { %s1867_s14 = scalar_lea.hbm %s2121_s0, %s1304_s11  ;;  %s227_s24 = scalar_lea.vmem [#allocation3], %s1240_s9 }
  0x35   : > { %s237_s21 = sshll.u32 %s227_s24, 4  ;;  %p1873_p13 = pnand %p1455_p12, %p1846_p6  ;;  %s1869_s21 = int_to_ptr.vmem [resolvable:$true] %s237_s21 }
  0x36   : > { %s1877_s28 = scalar_lea.sflag [#allocation4], %s223_s29  ;;  %s1605_s6 = scalar_lea.hbm %s1867_s14, 4096 }
  0x37   : > { %p1606_p0 = scmp.ne.s32.totalorder %s1867_s14, %s1605_s6  ;;  %p1607_p3 = pneg %p1873_p13 }
  0x38   : > { %s1610_s7 = scalar_lea.hbm %s2121_s0, 32768  ;;  %p1611_p9 = scmp.lt.u32.totalorder %s1867_s14, %s2121_s0 }
  0x39   : > { %p1608_p5 = pnand %p1607_p3, %p1606_p0  ;;  %p1612_p1 = scmp.lt.u32.totalorder %s1610_s7, %s1605_s6 }
  0x3a   : > { %p1614_p4 = scmp.lt.u32.totalorder %s1605_s6, %s1867_s14 }
  0x3b   : > { %p1609_p7 = pneg %p1608_p5  ;;  %p1613_p2 = por %p1612_p1, %p1611_p9 }
  0x3d   : > { %p1615_p6 = por %p1614_p4, %p1613_p2 }
  0x3f   : > { %p1616_p8 = pnand %p1615_p6, %p1609_p7 }
  0x41   : > { %1619 = shalt.err (!%p1616_p8)
}
  0x42   : > { %s1620_s29 = scalar_lea.vmem %s1869_s21, 4096  ;;  %s1726_s13 = smov [#allocation3]  }
  0x43   : > { %p1621_p12 = scmp.ne.s32.totalorder %s1869_s21, %s1620_s29  ;;  %s1625_s24 = sshll.u32 %s1726_s13, 4  ;;  %s1626_s24 = int_to_ptr.vmem [resolvable:$false] %s1625_s24 }
  0x44   : > { %s1627_s30 = scalar_lea.vmem %s1626_s24, 8192  ;;  %p1628_p5 = scmp.lt.s32.totalorder %s1869_s21, %s1626_s24 }
  0x45   : > { %p1623_p10 = pnand %p1621_p12, %p1607_p3  ;;  %p1629_p9 = scmp.lt.s32.totalorder %s1627_s30, %s1620_s29 }
  0x47   : > { %p1624_p0 = pneg %p1623_p10  ;;  %p1630_p1 = por %p1629_p9, %p1628_p5 }
  0x49   : > { %p1631_p2 = pnand %p1630_p1, %p1624_p0 }
  0x4b   : > { %1634 = shalt.err (!%p1631_p2)
}
  0x4c   : > { %s1727_s6 = smov 128   ;;  %s1728_s9 = smov 8  }
  0x4d   : > { %1449 = dma.hbm_to_vmem [thread:$0]  (!%p1873_p13), %s1867_s14, 4096, %s1869_s21, %s1877_s28, %s1727_s6, %s1727_s6, %s1728_s9  }
  0x4e   : > { %p2140_p3 = scmp.ne.s32.totalorder %s2134_s27, 0 }
  0x4f   : > { %s1908_s7 = sand.u32 (!%p2140_p3), 1, %s1705_s16   ;;  %p2141_p7 = scmp.ne.s32.totalorder (!%p2140_p3), %s2132_s25, 0 }
  0x50   : > { %249 = sbr.rel (%p2140_p3) target bundleno = 419 (0x1a3), region = 36  ;;  %s1245_s11 = sshll.u32 (!%p2140_p3), %s1908_s7, 8 }
  0x51   : > { %s252_s12 = scalar_lea.sflag (!%p2140_p3), [#allocation4], %s1908_s7  ;;  %s1914_s29 = scalar_lea.vmem (!%p2140_p3), [#allocation3], %s1245_s11 }
  0x57   : > { %1688 = dma.done.wait (%p2141_p7), %s252_s12, 4096  }
  0x58   : > { %1690 = vsyncadd (%p2141_p7), %s252_s12, 4294963200  ;;  %p2142_p13 = scmp.ne.s32.totalorder %s2130_s23, 0 }
  0x5a   : > { %1692 = dma.done.wait (%p2142_p13), [#allocation7], 2048  }
  0x5b   : > { %1694 = vsyncadd (%p2142_p13), [#allocation7], 4294965248  ;;  %v1513_v0 = vld [vmem:[#allocation6 + $0x40] sm:$0xff]   ;;  %v1515_v2 = vld [vmem:[#allocation6 + $0x48] sm:$0xff]   ;;  %s1976_s21 = scalar_lea.vmem [#allocation8], %s1245_s11  ;;  %s1305_s22 = sshll.u32 %s1713_s18, 12 }
  0x5c   : > { %v1514_v1 = vld [vmem:[#allocation6] sm:$0xff]   ;;  %1306 = vmatprep.subr.bf16.mxu0 %v1513_v0  ;;  %1418 = vmatprep.subr.bf16.mxu1 %v1513_v0  ;;  %v1516_v3 = vld [vmem:[#allocation6 + $0x8] sm:$0xff]   ;;  %v1517_v4 = vld [vmem:[#allocation6 + $0x50] sm:$0xff]   ;;  %s1106_s28 = sshll.u32 %s1976_s21, 4  ;;  %s2067_s30 = scalar_lea.hbm %s2125_s4, %s1305_s22  ;;  %s2069_s28 = int_to_ptr.vmem [resolvable:$true] %s1106_s28 }
  0x5d   : > { %1307 = vmatpush3.bf16.msra.mxu0 %v1514_v1  ;;  %1426 = vmatpush3.bf16.msra.mxu1 %v1514_v1  ;;  %v1518_v5 = vld [vmem:[#allocation6 + $0x10] sm:$0xff]   ;;  %v1519_v6 = vld [vmem:[#allocation6 + $0x58] sm:$0xff]   ;;  %v1521_v8 = vld [vmem:[#allocation6 + $0x60] sm:$0xff]   ;;  %s1092_s18 = scalar_lea.sflag [#allocation5], %s1908_s7  ;;  %s1635_s6 = scalar_lea.vmem %s2069_s28, 4096 }
  0x5e   : > { %1308 = vmatprep.subr.bf16.mxu0 %v1515_v2  ;;  %1419 = vmatprep.subr.bf16.mxu1 %v1515_v2  ;;  %v1520_v7 = vld [vmem:[#allocation6 + $0x18] sm:$0xff]   ;;  %v1522_v9 = vld [vmem:[#allocation6 + $0x20] sm:$0xff]   ;;  %v1523_v10 = vld [vmem:[#allocation6 + $0x68] sm:$0xff]   ;;  %p1636_p4 = scmp.ne.s32.totalorder %s2069_s28, %s1635_s6  ;;  %s1729_s9 = smov [#allocation8]  }
  0x5f   : > { %v1531_v11 = vld [vmem:[%s1914_s29 + $0x4] ss:$8 sps:$4 sm:$0xff]   ;;  %v1525_v14 = vld [vmem:[#allocation6 + $0x70] sm:$0xff]   ;;  %v1527_v16 = vld [vmem:[#allocation6 + $0x78] sm:$0xff]   ;;  %s1639_s11 = sshll.u32 %s1729_s9, 4  ;;  %s1640_s11 = int_to_ptr.vmem [resolvable:$false] %s1639_s11 }
  0x60   : > { %v1534_v12 = vld [vmem:[%s1914_s29 + $0x84] ss:$8 sps:$4 sm:$0xff]   ;;  %721 = vmatprep.mubr.bf16.mxu0 %v1531_v11  ;;  %v1526_v15 = vld [vmem:[#allocation6 + $0x30] sm:$0xff]   ;;  %v1528_v17 = vld [vmem:[#allocation6 + $0x38] sm:$0xff]   ;;  %p1637_p6 = pnand %p1636_p4, %p1852_p11  ;;  %s1641_s12 = scalar_lea.vmem %s1640_s11, 8192 }
  0x61   : > { %1309 = vmatpush3.bf16.msra.mxu0 %v1516_v3  ;;  %1427 = vmatpush3.bf16.msra.mxu1 %v1516_v3  ;;  %v1524_v13 = vld [vmem:[#allocation6 + $0x28] sm:$0xff]   ;;  %v1535_v20 = vld [vmem:[%s1914_s29 + $0x14] ss:$8 sps:$4 sm:$0xff]   ;;  %v1539_v22 = vld [vmem:[%s1914_s29 + $0x10] ss:$8 sps:$4 sm:$0xff]   ;;  %p1642_p12 = scmp.lt.s32.totalorder %s2069_s28, %s1640_s11  ;;  %p1643_p10 = scmp.lt.s32.totalorder %s1641_s12, %s1635_s6 }
  0x62   : > { %1310 = vmatprep.subr.bf16.mxu0 %v1517_v4  ;;  %1420 = vmatprep.subr.bf16.mxu1 %v1517_v4  ;;  %v1529_v18 = vld [vmem:[%s1914_s29] ss:$8 sps:$4 sm:$0xff]   ;;  %v1537_v21 = vld [vmem:[%s1914_s29 + $0x94] ss:$8 sps:$4 sm:$0xff]   ;;  %v1540_v23 = vld [vmem:[%s1914_s29 + $0x90] ss:$8 sps:$4 sm:$0xff]   ;;  %p1638_p8 = pneg %p1637_p6 }
  0x63   : > { %785 = vmatprep.mubr.bf16.mxu1 %v1534_v12  ;;  %v1532_v19 = vld [vmem:[%s1914_s29 + $0x80] ss:$8 sps:$4 sm:$0xff]   ;;  %v1541_v24 = vld [vmem:[%s1914_s29 + $0x24] ss:$8 sps:$4 sm:$0xff]   ;;  %v1547_v28 = vld [vmem:[%s1914_s29 + $0x34] ss:$8 sps:$4 sm:$0xff]   ;;  %p1644_p0 = por %p1643_p10, %p1642_p12 }
  0x64   : > { %v1543_v25 = vld [vmem:[%s1914_s29 + $0xa4] ss:$8 sps:$4 sm:$0xff]   ;;  %v1545_v26 = vld [vmem:[%s1914_s29 + $0x20] ss:$8 sps:$4 sm:$0xff]   ;;  %v1549_v29 = vld [vmem:[%s1914_s29 + $0xb4] ss:$8 sps:$4 sm:$0xff]  }
  0x65   : > { %1311 = vmatpush3.bf16.msra.mxu0 %v1518_v5  ;;  %1428 = vmatpush3.bf16.msra.mxu1 %v1518_v5  ;;  %v1546_v27 = vld [vmem:[%s1914_s29 + $0xa0] ss:$8 sps:$4 sm:$0xff]   ;;  %v1551_v30 = vld [vmem:[%s1914_s29 + $0x30] ss:$8 sps:$4 sm:$0xff]   ;;  %v1553_v32 = vld [vmem:[%s1914_s29 + $0x44] ss:$8 sps:$4 sm:$0xff]   ;;  %p1645_p5 = pnand %p1644_p0, %p1638_p8 }
  0x66   : > { %1312 = vmatprep.subr.bf16.mxu0 %v1519_v6  ;;  %1421 = vmatprep.subr.bf16.mxu1 %v1519_v6  ;;  %v1552_v31 = vld [vmem:[%s1914_s29 + $0xb0] ss:$8 sps:$4 sm:$0xff]   ;;  %v1555_v33 = vld [vmem:[%s1914_s29 + $0xc4] ss:$8 sps:$4 sm:$0xff]   ;;  %v1557_v34 = vld [vmem:[%s1914_s29 + $0x40] ss:$8 sps:$4 sm:$0xff]  }
  0x67   : > { %v1558_v35 = vld [vmem:[%s1914_s29 + $0xc0] ss:$8 sps:$4 sm:$0xff]   ;;  %v1559_v36 = vld [vmem:[%s1914_s29 + $0x54] ss:$8 sps:$4 sm:$0xff]   ;;  %v1563_v38 = vld [vmem:[%s1914_s29 + $0x50] ss:$8 sps:$4 sm:$0xff]  }
  0x68   : > { %v1561_v37 = vld [vmem:[%s1914_s29 + $0xd4] ss:$8 sps:$4 sm:$0xff]   ;;  %v1564_v39 = vld [vmem:[%s1914_s29 + $0xd0] ss:$8 sps:$4 sm:$0xff]   ;;  %v1565_v40 = vld [vmem:[%s1914_s29 + $0x64] ss:$8 sps:$4 sm:$0xff]  }
  0x69   : > { %1313 = vmatpush3.bf16.msra.mxu0 %v1520_v7  ;;  %1429 = vmatpush3.bf16.msra.mxu1 %v1520_v7  ;;  %v1567_v41 = vld [vmem:[%s1914_s29 + $0xe4] ss:$8 sps:$4 sm:$0xff]   ;;  %v1569_v42 = vld [vmem:[%s1914_s29 + $0x60] ss:$8 sps:$4 sm:$0xff]   ;;  %v1571_v44 = vld [vmem:[%s1914_s29 + $0x74] ss:$8 sps:$4 sm:$0xff]  }
  0x6a   : > { %1314 = vmatprep.subr.bf16.mxu0 %v1521_v8  ;;  %1422 = vmatprep.subr.bf16.mxu1 %v1521_v8  ;;  %v1570_v43 = vld [vmem:[%s1914_s29 + $0xe0] ss:$8 sps:$4 sm:$0xff]   ;;  %v1573_v45 = vld [vmem:[%s1914_s29 + $0xf4] ss:$8 sps:$4 sm:$0xff]   ;;  %v1575_v46 = vld [vmem:[%s1914_s29 + $0x70] ss:$8 sps:$4 sm:$0xff]  }
  0x6b   : > { %v1576_v47 = vld [vmem:[%s1914_s29 + $0xf0] ss:$8 sps:$4 sm:$0xff]   ;;  %v1959_v51 = vld [vmem:[%s2123_s2] ss:$0 sm:$0xff] }
  0x6c   : > { %v1964_v57 = vld [vmem:[%s2124_s3] ss:$0 sm:$0xff] }
  0x6d   : > { %1315 = vmatpush3.bf16.msra.mxu0 %v1522_v9  ;;  %1430 = vmatpush3.bf16.msra.mxu1 %v1522_v9 }
  0x6e   : > { %1316 = vmatprep.subr.bf16.mxu0 %v1523_v10  ;;  %1423 = vmatprep.subr.bf16.mxu1 %v1523_v10 }
  0x71   : > { %1317 = vmatpush3.bf16.msra.mxu0 %v1524_v13  ;;  %1431 = vmatpush3.bf16.msra.mxu1 %v1524_v13 }
  0x72   : > { %1318 = vmatprep.subr.bf16.mxu0 %v1525_v14  ;;  %1424 = vmatprep.subr.bf16.mxu1 %v1525_v14 }
  0x75   : > { %1319 = vmatpush3.bf16.msra.mxu0 %v1526_v15  ;;  %1432 = vmatpush3.bf16.msra.mxu1 %v1526_v15 }
  0x76   : > { %1320 = vmatprep.subr.bf16.mxu0 %v1527_v16  ;;  %1425 = vmatprep.subr.bf16.mxu1 %v1527_v16 }
  0x79   : > { %1321 = vmatpush3.bf16.msra.mxu0 %v1528_v17  ;;  %1433 = vmatpush3.bf16.msra.mxu1 %v1528_v17 }
  0x7c   : > { %722 = vmatmul.mubr.bf16.vlgmr.msra.gmra.mrb[0].mxu0 %v1529_v18  ;;  %786 = vmatmul.mubr.bf16.vlgmr.msra.gmra.mrb[0].mxu1 %v1532_v19 }
  0x7d   : > { %729 = vmatprep.mubr.bf16.mxu0 %v1535_v20  ;;  %793 = vmatprep.mubr.bf16.mxu1 %v1537_v21 }
  0x84   : > { %730 = vmatmul.mubr.bf16.gmra.mrb[4].mxu0 %v1539_v22  ;;  %794 = vmatmul.mubr.bf16.gmra.mrb[4].mxu1 %v1540_v23 }
  0x85   : > { %737 = vmatprep.mubr.bf16.mxu0 %v1541_v24  ;;  %801 = vmatprep.mubr.bf16.mxu1 %v1543_v25 }
  0x8c   : > { %738 = vmatmul.mubr.bf16.gmra.mrb[8].mxu0 %v1545_v26  ;;  %802 = vmatmul.mubr.bf16.gmra.mrb[8].mxu1 %v1546_v27 }
  0x8d   : > { %745 = vmatprep.mubr.bf16.mxu0 %v1547_v28  ;;  %809 = vmatprep.mubr.bf16.mxu1 %v1549_v29 }
  0x94   : > { %746 = vmatmul.mubr.bf16.gmra.mrb[12].mxu0 %v1551_v30  ;;  %810 = vmatmul.mubr.bf16.gmra.mrb[12].mxu1 %v1552_v31 }
  0x95   : > { %753 = vmatprep.mubr.bf16.mxu0 %v1553_v32  ;;  %817 = vmatprep.mubr.bf16.mxu1 %v1555_v33 }
  0x9c   : > { %754 = vmatmul.mubr.bf16.gmra.mrb[16].mxu0 %v1557_v34  ;;  %818 = vmatmul.mubr.bf16.gmra.mrb[16].mxu1 %v1558_v35 }
  0x9d   : > { %761 = vmatprep.mubr.bf16.mxu0 %v1559_v36  ;;  %825 = vmatprep.mubr.bf16.mxu1 %v1561_v37 }
  0xa4   : > { %762 = vmatmul.mubr.bf16.gmra.mrb[20].mxu0 %v1563_v38  ;;  %826 = vmatmul.mubr.bf16.gmra.mrb[20].mxu1 %v1564_v39 }
  0xa5   : > { %769 = vmatprep.mubr.bf16.mxu0 %v1565_v40  ;;  %833 = vmatprep.mubr.bf16.mxu1 %v1567_v41 }
  0xac   : > { %770 = vmatmul.mubr.bf16.gmra.mrb[24].mxu0 %v1569_v42  ;;  %834 = vmatmul.mubr.bf16.gmra.mrb[24].mxu1 %v1570_v43 }
  0xad   : > { %777 = vmatprep.mubr.bf16.mxu0 %v1571_v44  ;;  %841 = vmatprep.mubr.bf16.mxu1 %v1573_v45 }
  0xb4   : > { %778 = vmatmul.mubr.bf16.gmra.mrb[28].mxu0 %v1575_v46  ;;  %842 = vmatmul.mubr.bf16.gmra.mrb[28].mxu1 %v1576_v47 }
 0x14f   : > { %v1322_v48 = vpop.f32.mrb[0].mxu0  ;;  %v1370_v49 = vpop.f32.mrb[0].mxu1 }
 0x150   : > { %v1323_v50 = vpop.f32.mrb[1].mxu0  ;;  %v1371_v52 = vpop.f32.mrb[1].mxu1 }
 0x151   : > { %v1324_v53 = vadd.f32 %v1323_v50, %v1322_v48  ;;  %v1372_v54 = vadd.f32 %v1371_v52, %v1370_v49  ;;  %v1325_v55 = vpop.f32.mrb[2].mxu0  ;;  %v1373_v56 = vpop.f32.mrb[2].mxu1 }
 0x152   : > { %v1326_v58 = vpop.f32.mrb[3].mxu0  ;;  %v1374_v59 = vpop.f32.mrb[3].mxu1 }
 0x153   : > { %v956_v60 = vmul.f32 %v1324_v53, %v1959_v51  ;;  %v972_v61 = vmul.f32 %v1372_v54, %v1959_v51  ;;  %v1327_v62 = vadd.f32 %v1326_v58, %v1325_v55  ;;  %v1375_v63 = vadd.f32 %v1374_v59, %v1373_v56 }
 0x155   : > { %v995_v0 = vadd.f32 %v1964_v57, %v956_v60  ;;  %v1011_v1 = vadd.f32 %v1964_v57, %v972_v61  ;;  %v957_v2 = vmul.f32 %v1327_v62, %v1959_v51  ;;  %v973_v3 = vmul.f32 %v1375_v63, %v1959_v51 }
 0x157   : > { %v1027_v4 = vmax.f32 %v995_v0, 0.0  ;;  %v1043_v5 = vmax.f32 %v1011_v1, 0.0  ;;  %v996_v6 = vadd.f32 %v1964_v57, %v957_v2  ;;  %v1012_v7 = vadd.f32 %v1964_v57, %v973_v3  ;;  %v1328_v8 = vpop.f32.mrb[4].mxu0  ;;  %v1376_v9 = vpop.f32.mrb[4].mxu1 }
 0x158   : > { %v1329_v10 = vpop.f32.mrb[5].mxu0  ;;  %v1377_v11 = vpop.f32.mrb[5].mxu1 }
 0x159   : > { %1059 = vst [vmem:[%s1976_s21] sm:$0xff] %v1027_v4  ;;  %1075 = vst [vmem:[%s1976_s21 + $0x80] sm:$0xff] %v1043_v5  ;;  %v1028_v12 = vmax.f32 %v996_v6, 0.0  ;;  %v1044_v13 = vmax.f32 %v1012_v7, 0.0  ;;  %v1330_v14 = vadd.f32 %v1329_v10, %v1328_v8  ;;  %v1378_v15 = vadd.f32 %v1377_v11, %v1376_v9  ;;  %v1331_v16 = vpop.f32.mrb[6].mxu0  ;;  %v1379_v17 = vpop.f32.mrb[6].mxu1 }
 0x15a   : > { %v1332_v18 = vpop.f32.mrb[7].mxu0  ;;  %v1380_v19 = vpop.f32.mrb[7].mxu1 }
 0x15b   : > { %1060 = vst [vmem:[%s1976_s21 + $0x8] sm:$0xff] %v1028_v12  ;;  %1076 = vst [vmem:[%s1976_s21 + $0x88] sm:$0xff] %v1044_v13  ;;  %v958_v20 = vmul.f32 %v1330_v14, %v1959_v51  ;;  %v974_v21 = vmul.f32 %v1378_v15, %v1959_v51  ;;  %v1333_v22 = vadd.f32 %v1332_v18, %v1331_v16 }
 0x15c   : > { %v1381_v23 = vadd.f32 %v1380_v19, %v1379_v17 }
 0x15d   : > { %v997_v24 = vadd.f32 %v1964_v57, %v958_v20  ;;  %v1013_v25 = vadd.f32 %v1964_v57, %v974_v21  ;;  %v959_v26 = vmul.f32 %v1333_v22, %v1959_v51 }
 0x15e   : > { %v975_v27 = vmul.f32 %v1381_v23, %v1959_v51 }
 0x15f   : > { %v1029_v28 = vmax.f32 %v997_v24, 0.0  ;;  %v1045_v29 = vmax.f32 %v1013_v25, 0.0  ;;  %v998_v30 = vadd.f32 %v1964_v57, %v959_v26  ;;  %v1334_v32 = vpop.f32.mrb[8].mxu0  ;;  %v1382_v33 = vpop.f32.mrb[8].mxu1 }
 0x160   : > { %v1014_v31 = vadd.f32 %v1964_v57, %v975_v27  ;;  %v1335_v34 = vpop.f32.mrb[9].mxu0  ;;  %v1383_v35 = vpop.f32.mrb[9].mxu1 }
 0x161   : > { %1061 = vst [vmem:[%s1976_s21 + $0x10] sm:$0xff] %v1029_v28  ;;  %1077 = vst [vmem:[%s1976_s21 + $0x90] sm:$0xff] %v1045_v29  ;;  %v1030_v36 = vmax.f32 %v998_v30, 0.0  ;;  %v1336_v38 = vadd.f32 %v1335_v34, %v1334_v32  ;;  %v1384_v39 = vadd.f32 %v1383_v35, %v1382_v33  ;;  %v1337_v40 = vpop.f32.mrb[10].mxu0  ;;  %v1385_v41 = vpop.f32.mrb[10].mxu1 }
 0x162   : > { %v1046_v37 = vmax.f32 %v1014_v31, 0.0  ;;  %v1338_v42 = vpop.f32.mrb[11].mxu0  ;;  %v1386_v43 = vpop.f32.mrb[11].mxu1 }
 0x163   : > { %1062 = vst [vmem:[%s1976_s21 + $0x18] sm:$0xff] %v1030_v36  ;;  %v960_v44 = vmul.f32 %v1336_v38, %v1959_v51  ;;  %v976_v45 = vmul.f32 %v1384_v39, %v1959_v51  ;;  %v1339_v46 = vadd.f32 %v1338_v42, %v1337_v40  ;;  %v1387_v47 = vadd.f32 %v1386_v43, %v1385_v41 }
 0x164   : > { %1078 = vst [vmem:[%s1976_s21 + $0x98] sm:$0xff] %v1046_v37 }
 0x165   : > { %v999_v48 = vadd.f32 %v1964_v57, %v960_v44  ;;  %v1015_v49 = vadd.f32 %v1964_v57, %v976_v45  ;;  %v961_v50 = vmul.f32 %v1339_v46, %v1959_v51  ;;  %v977_v52 = vmul.f32 %v1387_v47, %v1959_v51 }
 0x167   : > { %v1031_v53 = vmax.f32 %v999_v48, 0.0  ;;  %v1047_v54 = vmax.f32 %v1015_v49, 0.0  ;;  %v1000_v55 = vadd.f32 %v1964_v57, %v961_v50  ;;  %v1016_v56 = vadd.f32 %v1964_v57, %v977_v52  ;;  %v1340_v58 = vpop.f32.mrb[12].mxu0  ;;  %v1388_v59 = vpop.f32.mrb[12].mxu1 }
 0x168   : > { %v1341_v60 = vpop.f32.mrb[13].mxu0  ;;  %v1389_v61 = vpop.f32.mrb[13].mxu1 }
 0x169   : > { %1063 = vst [vmem:[%s1976_s21 + $0x20] sm:$0xff] %v1031_v53  ;;  %1079 = vst [vmem:[%s1976_s21 + $0xa0] sm:$0xff] %v1047_v54  ;;  %v1032_v62 = vmax.f32 %v1000_v55, 0.0  ;;  %v1048_v63 = vmax.f32 %v1016_v56, 0.0  ;;  %v1342_v0 = vadd.f32 %v1341_v60, %v1340_v58  ;;  %v1390_v1 = vadd.f32 %v1389_v61, %v1388_v59  ;;  %v1343_v2 = vpop.f32.mrb[14].mxu0  ;;  %v1391_v3 = vpop.f32.mrb[14].mxu1 }
 0x16a   : > { %v1344_v4 = vpop.f32.mrb[15].mxu0  ;;  %v1392_v5 = vpop.f32.mrb[15].mxu1 }
 0x16b   : > { %1064 = vst [vmem:[%s1976_s21 + $0x28] sm:$0xff] %v1032_v62  ;;  %1080 = vst [vmem:[%s1976_s21 + $0xa8] sm:$0xff] %v1048_v63  ;;  %v962_v6 = vmul.f32 %v1342_v0, %v1959_v51  ;;  %v978_v7 = vmul.f32 %v1390_v1, %v1959_v51  ;;  %v1345_v8 = vadd.f32 %v1344_v4, %v1343_v2 }
 0x16c   : > { %v1393_v9 = vadd.f32 %v1392_v5, %v1391_v3 }
 0x16d   : > { %v1001_v10 = vadd.f32 %v1964_v57, %v962_v6  ;;  %v1017_v11 = vadd.f32 %v1964_v57, %v978_v7  ;;  %v963_v12 = vmul.f32 %v1345_v8, %v1959_v51 }
 0x16e   : > { %v979_v13 = vmul.f32 %v1393_v9, %v1959_v51 }
 0x16f   : > { %v1033_v14 = vmax.f32 %v1001_v10, 0.0  ;;  %v1049_v15 = vmax.f32 %v1017_v11, 0.0  ;;  %v1002_v16 = vadd.f32 %v1964_v57, %v963_v12  ;;  %v1346_v18 = vpop.f32.mrb[16].mxu0  ;;  %v1394_v19 = vpop.f32.mrb[16].mxu1 }
 0x170   : > { %v1018_v17 = vadd.f32 %v1964_v57, %v979_v13  ;;  %v1347_v20 = vpop.f32.mrb[17].mxu0  ;;  %v1395_v21 = vpop.f32.mrb[17].mxu1 }
 0x171   : > { %1065 = vst [vmem:[%s1976_s21 + $0x30] sm:$0xff] %v1033_v14  ;;  %1081 = vst [vmem:[%s1976_s21 + $0xb0] sm:$0xff] %v1049_v15  ;;  %v1034_v22 = vmax.f32 %v1002_v16, 0.0  ;;  %v1348_v24 = vadd.f32 %v1347_v20, %v1346_v18  ;;  %v1396_v25 = vadd.f32 %v1395_v21, %v1394_v19  ;;  %v1349_v26 = vpop.f32.mrb[18].mxu0  ;;  %v1397_v27 = vpop.f32.mrb[18].mxu1 }
 0x172   : > { %v1050_v23 = vmax.f32 %v1018_v17, 0.0  ;;  %v1350_v28 = vpop.f32.mrb[19].mxu0  ;;  %v1398_v29 = vpop.f32.mrb[19].mxu1 }
 0x173   : > { %1066 = vst [vmem:[%s1976_s21 + $0x38] sm:$0xff] %v1034_v22  ;;  %v964_v30 = vmul.f32 %v1348_v24, %v1959_v51  ;;  %v980_v31 = vmul.f32 %v1396_v25, %v1959_v51  ;;  %v1351_v32 = vadd.f32 %v1350_v28, %v1349_v26  ;;  %v1399_v33 = vadd.f32 %v1398_v29, %v1397_v27 }
 0x174   : > { %1082 = vst [vmem:[%s1976_s21 + $0xb8] sm:$0xff] %v1050_v23 }
 0x175   : > { %v1003_v34 = vadd.f32 %v1964_v57, %v964_v30  ;;  %v1019_v35 = vadd.f32 %v1964_v57, %v980_v31  ;;  %v965_v36 = vmul.f32 %v1351_v32, %v1959_v51  ;;  %v981_v37 = vmul.f32 %v1399_v33, %v1959_v51 }
 0x177   : > { %v1035_v38 = vmax.f32 %v1003_v34, 0.0  ;;  %v1051_v39 = vmax.f32 %v1019_v35, 0.0  ;;  %v1004_v40 = vadd.f32 %v1964_v57, %v965_v36  ;;  %v1020_v41 = vadd.f32 %v1964_v57, %v981_v37  ;;  %v1352_v42 = vpop.f32.mrb[20].mxu0  ;;  %v1400_v43 = vpop.f32.mrb[20].mxu1 }
 0x178   : > { %v1353_v44 = vpop.f32.mrb[21].mxu0  ;;  %v1401_v45 = vpop.f32.mrb[21].mxu1 }
 0x179   : > { %1067 = vst [vmem:[%s1976_s21 + $0x40] sm:$0xff] %v1035_v38  ;;  %1083 = vst [vmem:[%s1976_s21 + $0xc0] sm:$0xff] %v1051_v39  ;;  %v1036_v46 = vmax.f32 %v1004_v40, 0.0  ;;  %v1052_v47 = vmax.f32 %v1020_v41, 0.0  ;;  %v1354_v48 = vadd.f32 %v1353_v44, %v1352_v42  ;;  %v1402_v49 = vadd.f32 %v1401_v45, %v1400_v43  ;;  %v1355_v50 = vpop.f32.mrb[22].mxu0  ;;  %v1403_v52 = vpop.f32.mrb[22].mxu1 }
 0x17a   : > { %v1356_v53 = vpop.f32.mrb[23].mxu0  ;;  %v1404_v54 = vpop.f32.mrb[23].mxu1 }
 0x17b   : > { %1068 = vst [vmem:[%s1976_s21 + $0x48] sm:$0xff] %v1036_v46  ;;  %1084 = vst [vmem:[%s1976_s21 + $0xc8] sm:$0xff] %v1052_v47  ;;  %v966_v55 = vmul.f32 %v1354_v48, %v1959_v51  ;;  %v982_v56 = vmul.f32 %v1402_v49, %v1959_v51  ;;  %v1357_v58 = vadd.f32 %v1356_v53, %v1355_v50 }
 0x17c   : > { %v1405_v59 = vadd.f32 %v1404_v54, %v1403_v52 }
 0x17d   : > { %v1005_v60 = vadd.f32 %v1964_v57, %v966_v55  ;;  %v1021_v61 = vadd.f32 %v1964_v57, %v982_v56  ;;  %v967_v62 = vmul.f32 %v1357_v58, %v1959_v51 }
 0x17e   : > { %v983_v63 = vmul.f32 %v1405_v59, %v1959_v51 }
 0x17f   : > { %v1037_v0 = vmax.f32 %v1005_v60, 0.0  ;;  %v1053_v1 = vmax.f32 %v1021_v61, 0.0  ;;  %v1006_v2 = vadd.f32 %v1964_v57, %v967_v62  ;;  %v1358_v4 = vpop.f32.mrb[24].mxu0  ;;  %v1406_v5 = vpop.f32.mrb[24].mxu1 }
 0x180   : > { %v1022_v3 = vadd.f32 %v1964_v57, %v983_v63  ;;  %v1359_v6 = vpop.f32.mrb[25].mxu0  ;;  %v1407_v7 = vpop.f32.mrb[25].mxu1 }
 0x181   : > { %1069 = vst [vmem:[%s1976_s21 + $0x50] sm:$0xff] %v1037_v0  ;;  %1085 = vst [vmem:[%s1976_s21 + $0xd0] sm:$0xff] %v1053_v1  ;;  %v1038_v8 = vmax.f32 %v1006_v2, 0.0  ;;  %v1360_v10 = vadd.f32 %v1359_v6, %v1358_v4  ;;  %v1408_v11 = vadd.f32 %v1407_v7, %v1406_v5  ;;  %v1361_v12 = vpop.f32.mrb[26].mxu0  ;;  %v1409_v13 = vpop.f32.mrb[26].mxu1 }
 0x182   : > { %v1054_v9 = vmax.f32 %v1022_v3, 0.0  ;;  %v1362_v14 = vpop.f32.mrb[27].mxu0  ;;  %v1410_v15 = vpop.f32.mrb[27].mxu1 }
 0x183   : > { %1070 = vst [vmem:[%s1976_s21 + $0x58] sm:$0xff] %v1038_v8  ;;  %v968_v16 = vmul.f32 %v1360_v10, %v1959_v51  ;;  %v984_v17 = vmul.f32 %v1408_v11, %v1959_v51  ;;  %v1363_v18 = vadd.f32 %v1362_v14, %v1361_v12  ;;  %v1411_v19 = vadd.f32 %v1410_v15, %v1409_v13 }
 0x184   : > { %1086 = vst [vmem:[%s1976_s21 + $0xd8] sm:$0xff] %v1054_v9 }
 0x185   : > { %v1007_v20 = vadd.f32 %v1964_v57, %v968_v16  ;;  %v1023_v21 = vadd.f32 %v1964_v57, %v984_v17  ;;  %v969_v22 = vmul.f32 %v1363_v18, %v1959_v51  ;;  %v985_v23 = vmul.f32 %v1411_v19, %v1959_v51 }
 0x187   : > { %v1039_v24 = vmax.f32 %v1007_v20, 0.0  ;;  %v1055_v25 = vmax.f32 %v1023_v21, 0.0  ;;  %v1008_v26 = vadd.f32 %v1964_v57, %v969_v22  ;;  %v1024_v27 = vadd.f32 %v1964_v57, %v985_v23  ;;  %v1364_v28 = vpop.f32.mrb[28].mxu0  ;;  %v1412_v29 = vpop.f32.mrb[28].mxu1 }
 0x188   : > { %v1365_v30 = vpop.f32.mrb[29].mxu0  ;;  %v1413_v31 = vpop.f32.mrb[29].mxu1 }
 0x189   : > { %1071 = vst [vmem:[%s1976_s21 + $0x60] sm:$0xff] %v1039_v24  ;;  %1087 = vst [vmem:[%s1976_s21 + $0xe0] sm:$0xff] %v1055_v25  ;;  %v1040_v32 = vmax.f32 %v1008_v26, 0.0  ;;  %v1056_v33 = vmax.f32 %v1024_v27, 0.0  ;;  %v1366_v34 = vadd.f32 %v1365_v30, %v1364_v28  ;;  %v1414_v35 = vadd.f32 %v1413_v31, %v1412_v29  ;;  %v1367_v36 = vpop.f32.mrb[30].mxu0  ;;  %v1415_v37 = vpop.f32.mrb[30].mxu1 }
 0x18a   : > { %v1368_v38 = vpop.f32.mrb[31].mxu0  ;;  %v1416_v39 = vpop.f32.mrb[31].mxu1 }
 0x18b   : > { %1072 = vst [vmem:[%s1976_s21 + $0x68] sm:$0xff] %v1040_v32  ;;  %1088 = vst [vmem:[%s1976_s21 + $0xe8] sm:$0xff] %v1056_v33  ;;  %v970_v40 = vmul.f32 %v1366_v34, %v1959_v51  ;;  %v986_v41 = vmul.f32 %v1414_v35, %v1959_v51  ;;  %v1369_v42 = vadd.f32 %v1368_v38, %v1367_v36 }
 0x18c   : > { %v1417_v43 = vadd.f32 %v1416_v39, %v1415_v37 }
 0x18d   : > { %v1009_v44 = vadd.f32 %v1964_v57, %v970_v40  ;;  %v1025_v45 = vadd.f32 %v1964_v57, %v986_v41  ;;  %v971_v46 = vmul.f32 %v1369_v42, %v1959_v51 }
 0x18e   : > { %v987_v47 = vmul.f32 %v1417_v43, %v1959_v51 }
 0x18f   : > { %v1041_v48 = vmax.f32 %v1009_v44, 0.0  ;;  %v1057_v49 = vmax.f32 %v1025_v45, 0.0  ;;  %v1010_v50 = vadd.f32 %v1964_v57, %v971_v46 }
 0x190   : > { %v1026_v52 = vadd.f32 %v1964_v57, %v987_v47 }
 0x191   : > { %1073 = vst [vmem:[%s1976_s21 + $0x70] sm:$0xff] %v1041_v48  ;;  %1089 = vst [vmem:[%s1976_s21 + $0xf0] sm:$0xff] %v1057_v49  ;;  %v1042_v51 = vmax.f32 %v1010_v50, 0.0 }
 0x192   : > { %v1058_v53 = vmax.f32 %v1026_v52, 0.0 }
 0x193   : > { %1074 = vst [vmem:[%s1976_s21 + $0x78] sm:$0xff] %v1042_v51 }
 0x194   : > { %1090 = vst [vmem:[%s1976_s21 + $0xf8] sm:$0xff] %v1058_v53 }
 0x195   : > { %1648 = shalt.err (!%p1645_p5)
}
 0x196   : > { %s1649_s29 = scalar_lea.hbm %s2067_s30, 4096  ;;  %s1653_s27 = scalar_lea.hbm %s2125_s4, 32768 }
 0x197   : > { %p1650_p9 = scmp.ne.s32.totalorder %s2067_s30, %s1649_s29  ;;  %p1654_p3 = scmp.lt.u32.totalorder %s2067_s30, %s2125_s4 }
 0x198   : > { %p1655_p7 = scmp.lt.u32.totalorder %s1653_s27, %s1649_s29  ;;  %p1657_p4 = scmp.lt.u32.totalorder %s1649_s29, %s2067_s30 }
 0x199   : > { %p1651_p1 = pnand %p1650_p9, %p1852_p11 }
 0x19a   : > { %p1656_p13 = por %p1655_p7, %p1654_p3 }
 0x19b   : > { %p1652_p2 = pneg %p1651_p1 }
 0x19c   : > { %p1658_p6 = por %p1657_p4, %p1656_p13 }
 0x19e   : > { %p1659_p8 = pnand %p1658_p6, %p1652_p2 }
 0x1a0   : > { %1662 = shalt.err (!%p1659_p8)
}
 0x1a1   : > { %s1730_s22 = smov 128   ;;  %s1731_s13 = smov 8  }
 0x1a2   : > { %1440 = dma.vmem_to_hbm [thread:$0]  (%p1852_p11), %s2069_s28, 4096, %s2067_s30, %s1092_s18, %s1730_s22, %s1730_s22, %s1731_s13  }
 0x1a3 PF: > { %p1457_p12 = scmp.ge.s32.totalorder %s1721_s20, 2  ;;  %s1121_s24 = sand.u32 1, %s1701_s15  }
 0x1a4   : > { %p2143_p10 = scmp.ne.s32.totalorder %s2133_s26, 0  ;;  %s1122_s6 = scalar_lea.sflag [#allocation5], %s1121_s24 }
 0x1a6   : > { %p1451_p0 = pnand %p1457_p12, %p2143_p10 }
 0x1a8   : > { %1696 = dma.done.wait (!%p1451_p0), %s1122_s6, 4096  }
 0x1a9   : > { %1698 = vsyncadd (!%p1451_p0), %s1122_s6, 4294963200  ;;  %s21_s20 = sadd.s32 1, %s1721_s20   ;;  %s2144_s15 = smov %s1705_s16 }
 0x1aa   : > { %p18_p5 = scmp.ge.s32.totalorder %s21_s20, 10   ;;  %s2145_s16 = smov %s1709_s17 }
 0x1ab   : > { %s2146_s17 = smov %s1861_s10  ;;  %s2147_s18 = smov %s1717_s19 }
 0x1ac   : > { %s2148_s19 = smov %s2150_s5  ;;  %20 = sbr.rel (!%p18_p5) target bundleno = 7 (0x7), region = 100 }
 0x1b3   :  { %1127 = vsyncpa [#allocation4], 1 }
 0x1b4   :  { %1129 = vsyncpa [#allocation4 + $0x1], 1 }
 0x1b5   :  { %1130 = vsyncpa [#allocation7], 1 }
 0x1b6   :  { %1131 = vsyncpa [#allocation5], 1 }
 0x1b7   :  { %1133 = vsyncpa [#allocation5 + $0x1], 1 }

</bundles_post_ra>
